<compile_context>
chip_gen: v6e
topology: v6e:2x2x1
jax: 0.10.0
libtpu: 0.0.40
codegen_flags: <defaults>
</compile_context>

<pallas_src>
import jax
import jax.numpy as jnp
from jax.experimental import pallas as pl
from jax.experimental.pallas import tpu as pltpu

_LANE = 128


def _round_up(x, m):
    return ((x + m - 1) // m) * m


def _pick_tile_rows(H, W, cin, cout, out_bytes, vmem_budget=24 << 20):
    """Largest divisor TH of H whose double-buffered (padded) tiles fit the budget."""
    cin_p = _round_up(cin, _LANE)          # lane padding of the bf16 input tile
    cout2_p = _round_up(2 * cout, _LANE)   # lane padding of the output tile
    per_row = 2 * (W * cin_p * 2) + 2 * (2 * W * cout2_p * out_bytes)
    max_th = max(1, int(vmem_budget // per_row))
    th = 1
    for d in range(1, H + 1):
        if H % d == 0 and d <= max_th:
            th = d
    return th


def _upsample_tile_kernel(x_ref, w_ref, b_ref, o_ref):
    """Conv1x1(+folded BN) + LeakyReLU(0.1) + 2x nearest upsample for TH input rows.

    x_ref : (1, TH, W, Cin)        bf16 input rows
    w_ref : (Cin, Cout)            bf16 1x1-conv weight with BN scale folded in
    b_ref : (1, Cout)              f32 folded BN bias
    o_ref : (1, TH, 2, W, 2*Cout)  output view: (row, h-dup, col, w-dup x chan)
    """
    _, th, w, cin = x_ref.shape
    cout = w_ref.shape[1]

    x = x_ref[0].reshape(th * w, cin)                                   # (TH*W, Cin) bf16
    y = jnp.dot(x, w_ref[...], preferred_element_type=jnp.float32)      # MXU, f32 accumulator
    y = y + b_ref[...]                                                  # folded BN bias
    y = jnp.where(y >= 0.0, y, 0.1 * y)                                 # LeakyReLU(0.1)
    y = y.astype(o_ref.dtype)

    y2 = jnp.concatenate([y, y], axis=-1)                               # width x2: lane concat
    y2 = y2.reshape(th, w, 2 * cout)
    # Height x2: broadcast the same rows into both h-dup slots of the block.
    o_ref[0] = jnp.broadcast_to(y2[:, None, :, :], (th, 2, w, 2 * cout))


def upsample_forward_nhwc(x_nhwc, conv_w, gamma, beta, running_mean, running_var,
                          eps=1e-5, out_dtype=None):
    """NHWC forward: (N, H, W, Cin) -> (N, 2H, 2W, Cout)."""
    N, H, W, Cin = x_nhwc.shape
    Cout = conv_w.shape[0]
    if out_dtype is None:
        out_dtype = x_nhwc.dtype
    out_bytes = jnp.dtype(out_dtype).itemsize

    # Fold BatchNorm into the conv weight/bias (free, wrapper-side).
    inv_std = 1.0 / jnp.sqrt(running_var.astype(jnp.float32) + eps)
    scale = gamma.astype(jnp.float32) * inv_std                                 # (Cout,)
    wmat = (conv_w.reshape(Cout, Cin).T.astype(jnp.float32)
            * scale[None, :]).astype(jnp.bfloat16)                              # (Cin, Cout)
    bias = (beta.astype(jnp.float32)
            - running_mean.astype(jnp.float32) * scale).reshape(1, Cout)        # (1, Cout) f32

    x_bf16 = x_nhwc.astype(jnp.bfloat16)

    TH = _pick_tile_rows(H, W, Cin, Cout, out_bytes)
    grid = (N, H // TH)

    # Scoped-VMEM sizing: 2x double-buffered input + output tiles + weights + headroom.
    cin_p = _round_up(Cin, _LANE)
    cout2_p = _round_up(2 * Cout, _LANE)
    in_tile = TH * W * cin_p * 2
    out_tile = TH * 2 * W * cout2_p * out_bytes
    w_bytes = _round_up(Cin, 16) * _round_up(Cout, _LANE) * 2
    vmem_limit = int(min(max(2 * (2 * in_tile + 2 * out_tile) + w_bytes + (2 << 20),
                             8 << 20), 64 << 20))

    out = pl.pallas_call(
        _upsample_tile_kernel,
        out_shape=jax.ShapeDtypeStruct((N, H, 2, W, 2 * Cout), out_dtype),
        grid_spec=pltpu.PrefetchScalarGridSpec(
            num_scalar_prefetch=0,
            grid=grid,
            in_specs=[
                pl.BlockSpec((1, TH, W, Cin), lambda n, t: (n, t, 0, 0)),
                pl.BlockSpec((Cin, Cout), lambda n, t: (0, 0)),
                pl.BlockSpec((1, Cout), lambda n, t: (0, 0)),
            ],
            out_specs=pl.BlockSpec((1, TH, 2, W, 2 * Cout),
                                   lambda n, t: (n, t, 0, 0, 0)),
        ),
        compiler_params=pltpu.CompilerParams(
            dimension_semantics=("parallel", "parallel"),
            vmem_limit_bytes=vmem_limit),
    )(x_bf16, wmat, bias)

    # Free contiguous reshape: (N, H, 2, W, 2*Cout) -> (N, 2H, 2W, Cout).
    return out.reshape(N, 2 * H, 2 * W, Cout)


def upsample_forward(x_nchw, conv_w, gamma, beta, running_mean, running_var,
                     eps=1e-5, out_dtype=None):
    """PyTorch-layout forward: (N, Cin, H, W) -> (N, Cout, 2H, 2W)."""
    if out_dtype is None:
        out_dtype = x_nchw.dtype
    # Cast before the transpose so the layout change moves bf16, not f32, bytes.
    x_nhwc = jnp.transpose(x_nchw.astype(jnp.bfloat16), (0, 2, 3, 1))
    out_nhwc = upsample_forward_nhwc(x_nhwc, conv_w, gamma, beta,
                                     running_mean, running_var, eps, out_dtype)
    return jnp.transpose(out_nhwc, (0, 3, 1, 2))


def _reference(x_nchw, conv_w, gamma, beta, running_mean, running_var, eps=1e-5):
    """Plain-JAX f32 reference of the same forward pass (for verification)."""
    Cout, Cin = conv_w.shape[0], conv_w.shape[1]
    y = jnp.einsum('nchw,oc->nohw', x_nchw.astype(jnp.float32),
                   conv_w.reshape(Cout, Cin).astype(jnp.float32))
    inv_std = 1.0 / jnp.sqrt(running_var + eps)
    scale = (gamma * inv_std)[None, :, None, None]
    bias = (beta - running_mean * gamma * inv_std)[None, :, None, None]
    y = y * scale + bias
    y = jnp.where(y >= 0.0, y, 0.1 * y)
    y = jnp.repeat(jnp.repeat(y, 2, axis=2), 2, axis=3)
    return y


if __name__ == "__main__":
    key = jax.random.PRNGKey(0)
    k_x, k_w, k_g, k_b, k_m, k_v = jax.random.split(key, 6)

    N, Cin, Cout, H, W = 2, 4, 8, 16, 16

    x = jax.random.normal(k_x, (N, Cin, H, W), dtype=jnp.float32)
    # Shapes match nn.Conv2d(Cin, Cout, 1, bias=False) + nn.BatchNorm2d(Cout) (eval).
    conv_w = jax.random.normal(k_w, (Cout, Cin, 1, 1), dtype=jnp.float32) * 0.1
    gamma = 1.0 + 0.1 * jax.random.normal(k_g, (Cout,), dtype=jnp.float32)
    beta = 0.1 * jax.random.normal(k_b, (Cout,), dtype=jnp.float32)
    running_mean = 0.1 * jax.random.normal(k_m, (Cout,), dtype=jnp.float32)
    running_var = jnp.abs(jax.random.normal(k_v, (Cout,), dtype=jnp.float32)) + 0.5

    ref = _reference(x, conv_w, gamma, beta, running_mean, running_var)

    # Default path: f32 output (matches the PyTorch module); matmul runs in bf16.
    out = upsample_forward(x, conv_w, gamma, beta, running_mean, running_var)
    out = jax.block_until_ready(out)
    assert out.shape == (N, Cout, 2 * H, 2 * W), out.shape
    assert jnp.allclose(out, ref, atol=3e-2, rtol=3e-2), \
        float(jnp.max(jnp.abs(out - ref)))

    # bf16 I/O path (recommended when the surrounding model runs in bf16).
    out_bf16 = upsample_forward(x, conv_w, gamma, beta, running_mean, running_var,
                                out_dtype=jnp.bfloat16)
    out_bf16 = jax.block_until_ready(out_bf16).astype(jnp.float32)
    assert jnp.allclose(out_bf16, ref, atol=8e-2, rtol=8e-2), \
        float(jnp.max(jnp.abs(out_bf16 - ref)))

    print("KERNEL_OK")
</pallas_src>

<mosaic_0001>
module attributes {stable_mosaic.version = 11 : i64} {
  func.func @_upsample_tile_kernel(%arg0: i32, %arg1: i32, %arg2: memref<1x16x16x4xbf16, #tpu.memory_space<vmem>>, %arg3: memref<4x8xbf16, #tpu.memory_space<vmem>>, %arg4: memref<1x8xf32, #tpu.memory_space<vmem>>, %arg5: memref<1x16x2x16x16xf32, #tpu.memory_space<vmem>>) attributes {dimension_semantics = [#tpu.dimension_semantics<parallel>, #tpu.dimension_semantics<parallel>], iteration_bounds = array<i64: 2, 1>, scalar_prefetch = 0 : i64, scratch_operands = 0 : i64, tpu.core_type = #tpu.core_type<tc>, window_params = [{transform_indices = @transform_0, window_bounds = array<i64: 1, 16, 16, 4>}, {pipeline_mode = #tpu.pipeline_mode<synchronous>, transform_indices = @transform_1, window_bounds = array<i64: 4, 8>}, {pipeline_mode = #tpu.pipeline_mode<synchronous>, transform_indices = @transform_2, window_bounds = array<i64: 1, 8>}, {transform_indices = @transform_3, window_bounds = array<i64: 1, 16, 2, 16, 16>}]} {
    %c0 = arith.constant 0 : index
    %c0_0 = arith.constant 0 : index
    %c0_1 = arith.constant 0 : index
    %c0_2 = arith.constant 0 : index
    %0 = vector.load %arg2[%c0, %c0_0, %c0_1, %c0_2] : memref<1x16x16x4xbf16, #tpu.memory_space<vmem>>, vector<1x16x16x4xbf16>
    %1 = vector.shape_cast %0 : vector<1x16x16x4xbf16> to vector<16x16x4xbf16>
    %2 = vector.shape_cast %1 : vector<16x16x4xbf16> to vector<256x4xbf16>
    %c0_3 = arith.constant 0 : index
    %c0_4 = arith.constant 0 : index
    %3 = vector.load %arg3[%c0_3, %c0_4] : memref<4x8xbf16, #tpu.memory_space<vmem>>, vector<4x8xbf16>
    %cst = arith.constant dense<0.000000e+00> : vector<256x8xf32>
    %4 = tpu.matmul %2, %3, %cst {dimension_numbers = #tpu.dot_dimension_numbers<[1], [0], [0], [1], [0, 0, 1, 1], [], []>} : vector<256x4xbf16>, vector<4x8xbf16>, vector<256x8xf32> -> vector<256x8xf32>
    %c0_5 = arith.constant 0 : index
    %c0_6 = arith.constant 0 : index
    %5 = vector.load %arg4[%c0_5, %c0_6] : memref<1x8xf32, #tpu.memory_space<vmem>>, vector<1x8xf32>
    %6 = vector.broadcast %5 : vector<1x8xf32> to vector<256x8xf32>
    %7 = arith.addf %4, %6 : vector<256x8xf32>
    %cst_7 = arith.constant 0.000000e+00 : f32
    %8 = vector.broadcast %cst_7 : f32 to vector<256x8xf32>
    %9 = arith.cmpf oge, %7, %8 : vector<256x8xf32>
    %cst_8 = arith.constant 1.000000e-01 : f32
    %10 = vector.broadcast %cst_8 : f32 to vector<256x8xf32>
    %11 = arith.mulf %10, %7 : vector<256x8xf32>
    %12 = arith.select %9, %7, %11 : vector<256x8xi1>, vector<256x8xf32>
    %13 = tpu.concatenate %12, %12 in 1 : vector<256x8xf32>, vector<256x8xf32> -> vector<256x16xf32>
    %14 = vector.shape_cast %13 : vector<256x16xf32> to vector<16x16x16xf32>
    %15 = vector.shape_cast %14 : vector<16x16x16xf32> to vector<16x1x16x16xf32>
    %16 = vector.shape_cast %15 : vector<16x1x16x16xf32> to vector<16x1x16x16xf32>
    %17 = vector.broadcast %16 : vector<16x1x16x16xf32> to vector<16x2x16x16xf32>
    %c0_9 = arith.constant 0 : index
    %c0_10 = arith.constant 0 : index
    %c0_11 = arith.constant 0 : index
    %c0_12 = arith.constant 0 : index
    %c0_13 = arith.constant 0 : index
    %18 = vector.load %arg5[%c0_9, %c0_10, %c0_11, %c0_12, %c0_13] : memref<1x16x2x16x16xf32, #tpu.memory_space<vmem>>, vector<1x16x2x16x16xf32>
    %19 = vector.shape_cast %18 : vector<1x16x2x16x16xf32> to vector<16x2x16x16xf32>
    %20 = vector.shape_cast %17 : vector<16x2x16x16xf32> to vector<1x16x2x16x16xf32>
    tpu.vector_store %arg5[%c0_9, %c0_10, %c0_11, %c0_12, %c0_13], %20 {strides = array<i32>} : memref<1x16x2x16x16xf32, #tpu.memory_space<vmem>>, vector<1x16x2x16x16xf32>,
    return
  }
  func.func @transform_0(%arg0: i32, %arg1: i32) -> (i32, i32, i32, i32) {
    %c0_i32 = arith.constant 0 : i32
    %c0_i32_0 = arith.constant 0 : i32
    %c0_i32_1 = arith.constant 0 : i32
    return %arg0, %arg1, %c0_i32, %c0_i32_0 : i32, i32, i32, i32
  }
  func.func @transform_1(%arg0: i32, %arg1: i32) -> (i32, i32) {
    %c0_i32 = arith.constant 0 : i32
    %c0_i32_0 = arith.constant 0 : i32
    %c0_i32_1 = arith.constant 0 : i32
    return %c0_i32, %c0_i32_0 : i32, i32
  }
  func.func @transform_2(%arg0: i32, %arg1: i32) -> (i32, i32) {
    %c0_i32 = arith.constant 0 : i32
    %c0_i32_0 = arith.constant 0 : i32
    %c0_i32_1 = arith.constant 0 : i32
    return %c0_i32, %c0_i32_0 : i32, i32
  }
  func.func @transform_3(%arg0: i32, %arg1: i32) -> (i32, i32, i32, i32, i32) {
    %c0_i32 = arith.constant 0 : i32
    %c0_i32_0 = arith.constant 0 : i32
    %c0_i32_1 = arith.constant 0 : i32
    %c0_i32_2 = arith.constant 0 : i32
    return %arg0, %arg1, %c0_i32, %c0_i32_0, %c0_i32_1 : i32, i32, i32, i32, i32
  }
}

</mosaic_0001>

<bundles_post_ra>
// kernel: tpu_custom_call.1
= control target key start
LH: loop header
LB: loop body
LE: loop exit
PB: predicated region body
PF: predicated region fallthrough
CT: control target
= control target key end

     0   :  { %8 = vsyncpa [#allocation3], 0  ;;  %s1752_s0 = inlined_call_operand.vmem [shape: bf16[2,16,16,4], index: 0, kind: input, shape index: {}]   ;;  %s1753_s1 = inlined_call_operand.vmem [shape: bf16[4,8], index: 1, kind: input, shape index: {}]   ;;  %s1754_s2 = inlined_call_operand.vmem [shape: f32[1,8], index: 2, kind: input, shape index: {}]   ;;  %s1755_s3 = inlined_call_operand.hbm [shape: f32[2,16,2,16,16], index: 3, kind: output, shape index: {}]  }
   0x1   :  { %10 = vsyncpa [#allocation3 + $0x1], 0  ;;  %s1236_s12 = smov 0   ;;  %s1238_s13 = smov 0  }
   0x2   :  { %s1240_s14 = smov 0   ;;  %s1242_s15 = smov 0  }
   0x3   :  { %s1244_s16 = smov 0   ;;  %s1246_s17 = smov 0  }
   0x4 LB: > { %s959_s18 = sadd.s32 4294967295, %s1211_s17   ;;  %s960_s19 = sadd.s32 4294967294, %s1211_s17   ;;  %s1211_s17 = sphi %s1246_s17, %s16_s17   ;;  %s1207_s16 = sphi %s1244_s16, %s1762_s16   ;;  %s1203_s15 = sphi %s1242_s15, %s1761_s15   ;;  %s1199_s14 = sphi %s1240_s14, %s1760_s14   ;;  %s1195_s13 = sphi %s1238_s13, %s1759_s13   ;;  %s1191_s12 = sphi %s1236_s12, %s1758_s12  }
   0x5   : > { %s28_s20 = sadd.s32 1, %s1207_s16  ;;  %s107_s21 = sadd.s32 1, %s1199_s14 }
   0x6   : > { %p30_p0 = scmp.ge.s32.totalorder %s28_s20, 2  ;;  %p117_p1 = scmp.ne.s32.totalorder %s1199_s14, %s1195_s13 }
   0x7   : > { %p118_p2 = scmp.eq.s32.totalorder %s959_s18, 1  ;;  %p123_p3 = scmp.ne.s32.totalorder %s1195_s13, %s1191_s12 }
   0x8   : > { %s1764_s20 = smov (%p30_p0, %s28_s20), 0  ;;  %p124_p5 = scmp.eq.s32.totalorder %s960_s19, 1 }
   0x9   : > { %p1276_p4 = por %p118_p2, %p117_p1  ;;  %s102_s23 = ssub.s32 %s1207_s16, %s1764_s20 }
   0xa   : > { %p963_p6 = scmp.ge.s32.totalorder %s1211_s17, 1  ;;  %p105_p7 = scmp.eq.s32.totalorder %s102_s23, 0 }
   0xb   : > { %p1283_p8 = por %p124_p5, %p123_p3  ;;  %p162_p9 = scmp.lt.s32.totalorder %s1211_s17, 3 }
   0xc   : > { %s1289_s25 = scalar_select %p105_p7, %s1199_s14, %s107_s21  }
   0xd   : > { %p163_p10 = pnand %p963_p6, %p162_p9 }
   0xe   : > { %p192_p11 = scmp.lt.s32.totalorder (!%p163_p10), %s1203_s15, 1  ;;  %s1213_s8 = smov (!%p163_p10), 8  }
   0xf   : > { %166 = sbr.rel (%p163_p10) target bundleno = 415 (0x19f), region = 32  ;;  %s188_s9 = sand.u32 (!%p163_p10), 1, %s1195_s13  }
  0x10   : > { %s964_s10 = sshll.u32 (!%p163_p10), %s188_s9, 9  ;;  %s1006_s18 = sshll.u32 (!%p163_p10), %s1203_s15, 13 }
  0x11   : > { %s1505_s11 = scalar_lea.vmem (!%p163_p10), [#allocation2], %s964_s10  ;;  %s1706_s26 = scalar_lea.sflag (!%p163_p10), [#allocation3], %s188_s9 }
  0x12   : > { %s877_s19 = sshll.u32 (!%p163_p10), %s1505_s11, 4  ;;  %s1692_s19 = int_to_ptr.vmem [resolvable:$true] %s877_s19 }
  0x13   : > { %s1135_s27 = scalar_lea.vmem (!%p163_p10), %s1692_s19, 8192 }
  0x14   : > { %v236_v0 = vld [vmem:[%s1753_s1] sm:$0x3]  ;;  %vm373_vm0 = vcmask 1041408   ;;  %s193_s28 = scalar_select %p192_p11, %s1203_s15, 1  ;;  %vm324_vm1 = vcmask 31744  }
  0x15   : > { %1060 = vmatprep.subr.msk.bf16.mxu0 %vm373_vm0, %v236_v0  ;;  %1061 = vmatprep.subr.msk.bf16.mxu1 %vm373_vm0, %v236_v0  ;;  %v375_v1 = vsel %vm373_vm0, %v236_v0, 0  ;;  %v1336_v18 = vld [vmem:[%s1754_s2] ss:$0 sm:$0xff]  ;;  %s1688_s15 = scalar_lea.hbm %s1755_s3, %s1006_s18  ;;  %p1136_p12 = scmp.ne.s32.totalorder %s1692_s19, %s1135_s27 }
  0x16   : > { %1025 = vmatpush3.bf16.msra.mxu0 %v375_v1  ;;  %1059 = vmatpush3.bf16.msra.mxu1 %v375_v1  ;;  %s1005_s29 = sshll.u32 %s193_s28, 7  ;;  %s1214_s28 = smov [#allocation2]  }
  0x17   : > { %s1299_s5 = scalar_lea.vmem %s1752_s0, %s1005_s29  ;;  %p1137_p13 = pnand %p1136_p12, %p1276_p4 }
  0x18   : > { %v1119_v2 = vld [vmem:[%s1299_s5] sm:$0xff]   ;;  %v1121_v4 = vld [vmem:[%s1299_s5 + $0x8] sm:$0xff]   ;;  %v1123_v6 = vld [vmem:[%s1299_s5 + $0x10] sm:$0xff]   ;;  %s1139_s29 = sshll.u32 %s1214_s28, 4  ;;  %s1140_s29 = int_to_ptr.vmem [resolvable:$false] %s1139_s29 }
  0x19   : > { %v1120_v3 = vld [vmem:[%s1299_s5 + $0x40] sm:$0xff]   ;;  %1026 = vmatprep.mubr.msk.bf16.mxu0 %vm324_vm1, %v1119_v2  ;;  %v1122_v5 = vld [vmem:[%s1299_s5 + $0x48] sm:$0xff]   ;;  %v1124_v7 = vld [vmem:[%s1299_s5 + $0x50] sm:$0xff]   ;;  %p1138_p0 = pneg %p1137_p13  ;;  %s1141_s30 = scalar_lea.vmem %s1140_s29, 16384 }
  0x1a   : > { %1042 = vmatprep.mubr.msk.bf16.mxu1 %vm324_vm1, %v1120_v3  ;;  %1027 = vmatmul.mubr.msk.bf16.vlgmr.msra.gmra.mxu0 %vm324_vm1, %v1121_v4  ;;  %v1125_v8 = vld [vmem:[%s1299_s5 + $0x18] sm:$0xff]   ;;  %v1127_v10 = vld [vmem:[%s1299_s5 + $0x20] sm:$0xff]   ;;  %v1128_v12 = vld [vmem:[%s1299_s5 + $0x28] sm:$0xff]   ;;  %p1142_p1 = scmp.lt.s32.totalorder %s1692_s19, %s1140_s29  ;;  %p1143_p2 = scmp.lt.s32.totalorder %s1141_s30, %s1135_s27 }
  0x1b   : > { %1043 = vmatmul.mubr.msk.bf16.vlgmr.msra.gmra.mxu1 %vm324_vm1, %v1122_v5  ;;  %1030 = vmatprep.mubr.msk.bf16.mxu0 %vm324_vm1, %v1123_v6  ;;  %v1126_v9 = vld [vmem:[%s1299_s5 + $0x58] sm:$0xff]   ;;  %v1129_v11 = vld [vmem:[%s1299_s5 + $0x60] sm:$0xff]   ;;  %v1130_v13 = vld [vmem:[%s1299_s5 + $0x68] sm:$0xff]  }
  0x1c   : > { %1046 = vmatprep.mubr.msk.bf16.mxu1 %vm324_vm1, %v1124_v7  ;;  %v1131_v14 = vld [vmem:[%s1299_s5 + $0x30] sm:$0xff]   ;;  %v1132_v16 = vld [vmem:[%s1299_s5 + $0x38] sm:$0xff]   ;;  %p1144_p3 = por %p1143_p2, %p1142_p1 }
  0x1d   : > { %v1133_v15 = vld [vmem:[%s1299_s5 + $0x70] sm:$0xff]   ;;  %v1134_v17 = vld [vmem:[%s1299_s5 + $0x78] sm:$0xff]  }
  0x1e   : > { %p1145_p5 = pnand %p1144_p3, %p1138_p0 }
  0x22   : > { %1031 = vmatmul.mubr.msk.bf16.gmra.mxu0 %vm324_vm1, %v1125_v8 }
  0x23   : > { %1047 = vmatmul.mubr.msk.bf16.gmra.mxu1 %vm324_vm1, %v1126_v9  ;;  %1034 = vmatprep.mubr.msk.bf16.mxu0 %vm324_vm1, %v1127_v10 }
  0x24   : > { %1050 = vmatprep.mubr.msk.bf16.mxu1 %vm324_vm1, %v1129_v11 }
  0x2a   : > { %1035 = vmatmul.mubr.msk.bf16.gmra.mxu0 %vm324_vm1, %v1128_v12 }
  0x2b   : > { %1051 = vmatmul.mubr.msk.bf16.gmra.mxu1 %vm324_vm1, %v1130_v13  ;;  %1038 = vmatprep.mubr.msk.bf16.mxu0 %vm324_vm1, %v1131_v14 }
  0x2c   : > { %1054 = vmatprep.mubr.msk.bf16.mxu1 %vm324_vm1, %v1133_v15 }
  0x32   : > { %1039 = vmatmul.mubr.msk.bf16.gmra.mxu0 %vm324_vm1, %v1132_v16 }
  0x33   : > { %1055 = vmatmul.mubr.msk.bf16.gmra.mxu1 %vm324_vm1, %v1134_v17 }
  0xda   : > { %v1028_v19 = vpop.f32.mrf.mxu0 }
  0xdb   : > { %v420_v20 = vadd.f32 %v1028_v19, %v1336_v18  ;;  %v1044_v21 = vpop.f32.mrf.mxu1 }
  0xdc   : > { %v484_v22 = vadd.f32 %v1044_v21, %v1336_v18  ;;  %v411_v23 = vpop.f32.mrf.mxu0 }
  0xdd   : > { %v412_v24 = vadd.f32 %v1336_v18, %v411_v23  ;;  %v475_v25 = vpop.f32.mrf.mxu1  ;;  %vm540_vm2 = vcmp.ge.f32.partialorder %v420_v20, 0.0  ;;  %v572_v26 = vmul.f32 0.1, %v420_v20 }
  0xde   : > { %v1029_v27 = vpop.f32.mrf.mxu0  ;;  %vm556_vm3 = vcmp.ge.f32.partialorder %v484_v22, 0.0  ;;  %v588_v28 = vmul.f32 0.1, %v484_v22  ;;  %v476_v33 = vadd.f32 %v1336_v18, %v475_v25 }
  0xdf   : > { %v423_v29 = vadd.f32 %v1029_v27, %v1336_v18  ;;  %v1045_v30 = vpop.f32.mrf.mxu1  ;;  %v1342_v31 = vsel %vm540_vm2, %v420_v20, %v572_v26  ;;  %v570_v32 = vmul.f32 0.1, %v412_v24  ;;  %vm538_vm5 = vcmp.ge.f32.partialorder %v412_v24, 0.0 }
  0xe0   : > { %v487_v34 = vadd.f32 %v1045_v30, %v1336_v18  ;;  %v1346_v35 = vsel %vm556_vm3, %v484_v22, %v588_v28  ;;  %670 = vrot.lane.b32.xlu1 %v1342_v31, %s1213_s8  ;;  %v414_v36 = vpop.f32.mrf.mxu0  ;;  %v586_v44 = vmul.f32 0.1, %v476_v33  ;;  %vm554_vm7 = vcmp.ge.f32.partialorder %v476_v33, 0.0 }
  0xe1   : > { %v573_v37 = vmul.f32 0.1, %v423_v29  ;;  %702 = vrot.lane.b32.xlu0 %v1346_v35, %s1213_s8  ;;  %v478_v38 = vpop.f32.mrf.mxu1  ;;  %vm541_vm4 = vcmp.ge.f32.partialorder %v423_v29, 0.0  ;;  %v415_v45 = vadd.f32 %v1336_v18, %v414_v36  ;;  %v1358_v47 = vsel %vm538_vm5, %v412_v24, %v570_v32 }
  0xe2   : > { %v1032_v39 = vpop.f32.mrf.mxu0  ;;  %v589_v40 = vmul.f32 0.1, %v487_v34  ;;  %v479_v41 = vadd.f32 %v1336_v18, %v478_v38  ;;  %vm557_vm6 = vcmp.ge.f32.partialorder %v487_v34, 0.0  ;;  %v1368_v55 = vsel %vm554_vm7, %v476_v33, %v586_v44 }
  0xe3   : > { %v1048_v42 = vpop.f32.mrf.mxu1  ;;  %v1353_v43 = vsel %vm541_vm4, %v423_v29, %v573_v37  ;;  %v571_v53 = vmul.f32 0.1, %v415_v45  ;;  %v436_v54 = vadd.f32 %v1032_v39, %v1336_v18  ;;  %vm539_vm9 = vcmp.ge.f32.partialorder %v415_v45, 0.0 }
  0xe4   : > { %672 = vrot.lane.b32.xlu1 %v1353_v43, %s1213_s8  ;;  %v427_v46 = vpop.f32.mrf.mxu0  ;;  %v587_v50 = vmul.f32 0.1, %v479_v41  ;;  %v1363_v52 = vsel %vm557_vm6, %v487_v34, %v589_v40  ;;  %vm555_vm8 = vcmp.ge.f32.partialorder %v479_v41, 0.0  ;;  %v500_v61 = vadd.f32 %v1048_v42, %v1336_v18 }
  0xe5   : > { %666 = vrot.lane.b32.xlu0 %v1358_v47, %s1213_s8  ;;  %v491_v48 = vpop.f32.mrf.mxu1  ;;  %v576_v60 = vmul.f32 0.1, %v436_v54  ;;  %v1378_v63 = vsel %vm539_vm9, %v415_v45, %v571_v53  ;;  %vm544_vm11 = vcmp.ge.f32.partialorder %v436_v54, 0.0  ;;  %v428_v5 = vadd.f32 %v1336_v18, %v427_v46 }
  0xe6   : > { %v1033_v49 = vpop.f32.mrf.mxu0  ;;  %v1373_v59 = vsel %vm555_vm8, %v479_v41, %v587_v50  ;;  %v592_v4 = vmul.f32 0.1, %v500_v61  ;;  %vm560_vm13 = vcmp.ge.f32.partialorder %v500_v61, 0.0  ;;  %v492_v13 = vadd.f32 %v1336_v18, %v491_v48 }
  0xe7   : > { %v439_v51 = vadd.f32 %v1033_v49, %v1336_v18  ;;  %v1049_v56 = vpop.f32.mrf.mxu1  ;;  %v1388_v7 = vsel %vm544_vm11, %v436_v54, %v576_v60  ;;  %v574_v14 = vmul.f32 0.1, %v428_v5  ;;  %vm542_vm15 = vcmp.ge.f32.partialorder %v428_v5, 0.0 }
  0xe8   : > { %704 = vrot.lane.b32.xlu1 %v1363_v52, %s1213_s8  ;;  %v503_v58 = vadd.f32 %v1049_v56, %v1336_v18  ;;  %v430_v62 = vpop.f32.mrf.mxu0  ;;  %v1398_v15 = vsel %vm560_vm13, %v500_v61, %v592_v4  ;;  %v590_v22 = vmul.f32 0.1, %v492_v13  ;;  %vm558_vm1 = vcmp.ge.f32.partialorder %v492_v13, 0.0 }
  0xe9   : > { %698 = vrot.lane.b32.xlu0 %v1368_v55, %s1213_s8  ;;  %v577_v57 = vmul.f32 0.1, %v439_v51  ;;  %vm545_vm10 = vcmp.ge.f32.partialorder %v439_v51, 0.0  ;;  %v431_v2 = vadd.f32 %v1336_v18, %v430_v62  ;;  %v494_v6 = vpop.f32.mrf.mxu1  ;;  %v1408_v24 = vsel %vm542_vm15, %v428_v5, %v574_v14 }
  0xea   : > { %v1036_v0 = vpop.f32.mrf.mxu0  ;;  %v593_v1 = vmul.f32 0.1, %v503_v58  ;;  %vm561_vm12 = vcmp.ge.f32.partialorder %v503_v58, 0.0  ;;  %v495_v10 = vadd.f32 %v1336_v18, %v494_v6  ;;  %v1418_v33 = vsel %vm558_vm1, %v492_v13, %v590_v22 }
  0xeb   : > { %v1383_v3 = vsel %vm545_vm10, %v439_v51, %v577_v57  ;;  %v1052_v9 = vpop.f32.mrf.mxu1  ;;  %v575_v11 = vmul.f32 0.1, %v431_v2  ;;  %vm543_vm14 = vcmp.ge.f32.partialorder %v431_v2, 0.0  ;;  %v452_v23 = vadd.f32 %v1036_v0, %v1336_v18 }
  0xec   : > { %700 = vrot.lane.b32.xlu1 %v1373_v59, %s1213_s8  ;;  %v443_v8 = vpop.f32.mrf.mxu0  ;;  %v1393_v12 = vsel %vm561_vm12, %v503_v58, %v593_v1  ;;  %v591_v19 = vmul.f32 0.1, %v495_v10  ;;  %vm559_vm0 = vcmp.ge.f32.partialorder %v495_v10, 0.0  ;;  %v516_v32 = vadd.f32 %v1052_v9, %v1336_v18 }
  0xed   : > { %668 = vrot.lane.b32.xlu0 %v1378_v63, %s1213_s8  ;;  %v507_v17 = vpop.f32.mrf.mxu1  ;;  %v1403_v21 = vsel %vm543_vm14, %v431_v2, %v575_v11  ;;  %v580_v30 = vmul.f32 0.1, %v452_v23  ;;  %vm548_vm3 = vcmp.ge.f32.partialorder %v452_v23, 0.0  ;;  %v444_v40 = vadd.f32 %v1336_v18, %v443_v8 }
  0xee   : > { %v1037_v16 = vpop.f32.mrf.mxu0  ;;  %v1413_v29 = vsel %vm559_vm0, %v495_v10, %v591_v19  ;;  %v596_v41 = vmul.f32 0.1, %v516_v32  ;;  %vm564_vm5 = vcmp.ge.f32.partialorder %v516_v32, 0.0  ;;  %v508_v51 = vadd.f32 %v1336_v18, %v507_v17 }
  0xef   : > { %v455_v20 = vadd.f32 %v1037_v16, %v1336_v18  ;;  %v1053_v26 = vpop.f32.mrf.mxu1  ;;  %v1428_v44 = vsel %vm548_vm3, %v452_v23, %v580_v30  ;;  %v578_v50 = vmul.f32 0.1, %v444_v40  ;;  %vm546_vm7 = vcmp.ge.f32.partialorder %v444_v40, 0.0 }
  0xf0   : > { %680 = vrot.lane.b32.xlu1 %v1383_v3, %s1213_s8  ;;  %v446_v25 = vpop.f32.mrf.mxu0  ;;  %v519_v28 = vadd.f32 %v1053_v26, %v1336_v18  ;;  %v1438_v54 = vsel %vm564_vm5, %v516_v32, %v596_v41  ;;  %v594_v61 = vmul.f32 0.1, %v508_v51  ;;  %vm562_vm9 = vcmp.ge.f32.partialorder %v508_v51, 0.0 }
  0xf1   : > { %678 = vrot.lane.b32.xlu0 %v1388_v7, %s1213_s8  ;;  %v581_v27 = vmul.f32 0.1, %v455_v20  ;;  %vm549_vm2 = vcmp.ge.f32.partialorder %v455_v20, 0.0  ;;  %v510_v36 = vpop.f32.mrf.mxu1  ;;  %v447_v37 = vadd.f32 %v1336_v18, %v446_v25  ;;  %v1448_v2 = vsel %vm546_vm7, %v444_v40, %v578_v50 }
  0xf2   : > { %v1040_v34 = vpop.f32.mrf.mxu0  ;;  %v597_v38 = vmul.f32 0.1, %v519_v28  ;;  %vm565_vm4 = vcmp.ge.f32.partialorder %v519_v28, 0.0  ;;  %v511_v48 = vadd.f32 %v1336_v18, %v510_v36  ;;  %v1458_v11 = vsel %vm562_vm9, %v508_v51, %v594_v61 }
  0xf3   : > { %v1423_v39 = vsel %vm549_vm2, %v455_v20, %v581_v27  ;;  %v1056_v45 = vpop.f32.mrf.mxu1  ;;  %v579_v46 = vmul.f32 0.1, %v447_v37  ;;  %vm547_vm6 = vcmp.ge.f32.partialorder %v447_v37, 0.0  ;;  %v468_v62 = vadd.f32 %v1040_v34, %v1336_v18 }
  0xf4   : > { %712 = vrot.lane.b32.xlu1 %v1393_v12, %s1213_s8  ;;  %v459_v42 = vpop.f32.mrf.mxu0  ;;  %v1433_v49 = vsel %vm565_vm4, %v519_v28, %v597_v38  ;;  %v595_v57 = vmul.f32 0.1, %v511_v48  ;;  %vm563_vm8 = vcmp.ge.f32.partialorder %v511_v48, 0.0  ;;  %v532_v26 = vadd.f32 %v1056_v45, %v1336_v18 }
  0xf5   : > { %710 = vrot.lane.b32.xlu0 %v1398_v15, %s1213_s8  ;;  %v523_v56 = vpop.f32.mrf.mxu1  ;;  %v1443_v60 = vsel %vm547_vm6, %v447_v37, %v579_v46  ;;  %v584_v8 = vmul.f32 0.1, %v468_v62  ;;  %v460_v9 = vadd.f32 %v1336_v18, %v459_v42  ;;  %vm552_vm11 = vcmp.ge.f32.partialorder %v468_v62, 0.0 }
  0xf6   : > { %v1041_v53 = vpop.f32.mrf.mxu0  ;;  %v1453_v6 = vsel %vm563_vm8, %v511_v48, %v595_v57  ;;  %v524_v19 = vadd.f32 %v1336_v18, %v523_v56  ;;  %v600_v34 = vmul.f32 0.1, %v532_v26  ;;  %vm568_vm1 = vcmp.ge.f32.partialorder %v532_v26, 0.0 }
  0xf7   : > { %v471_v58 = vadd.f32 %v1041_v53, %v1336_v18  ;;  %v1057_v1 = vpop.f32.mrf.mxu1  ;;  %v582_v17 = vmul.f32 0.1, %v460_v9  ;;  %v1468_v20 = vsel %vm552_vm11, %v468_v62, %v584_v8  ;;  %vm550_vm13 = vcmp.ge.f32.partialorder %v460_v9, 0.0 }
  0xf8   : > { %676 = vrot.lane.b32.xlu1 %v1403_v21, %s1213_s8  ;;  %v462_v0 = vpop.f32.mrf.mxu0  ;;  %v535_v22 = vadd.f32 %v1057_v1, %v1336_v18  ;;  %v598_v27 = vmul.f32 0.1, %v524_v19  ;;  %vm566_vm15 = vcmp.ge.f32.partialorder %v524_v19, 0.0  ;;  %v1494_v37 = vsel %vm568_vm1, %v532_v26, %v600_v34 }
  0xf9   : > { %674 = vrot.lane.b32.xlu0 %v1408_v24, %s1213_s8  ;;  %v585_v4 = vmul.f32 0.1, %v471_v58  ;;  %v463_v5 = vadd.f32 %v1336_v18, %v462_v0  ;;  %v526_v10 = vpop.f32.mrf.mxu1  ;;  %vm553_vm10 = vcmp.ge.f32.partialorder %v471_v58, 0.0  ;;  %v1478_v28 = vsel %vm550_vm13, %v460_v9, %v582_v17 }
  0xfa   : > { %v527_v14 = vadd.f32 %v1336_v18, %v526_v10  ;;  %v601_v30 = vmul.f32 0.1, %v535_v22  ;;  %v1486_v18 = vsel %vm566_vm15, %v524_v19, %v598_v27  ;;  %vm569_vm0 = vcmp.ge.f32.partialorder %v535_v22, 0.0 }
  0xfb   : > { %v583_v13 = vmul.f32 0.1, %v463_v5  ;;  %v1463_v16 = vsel %vm553_vm10, %v471_v58, %v585_v4  ;;  %vm551_vm12 = vcmp.ge.f32.partialorder %v463_v5, 0.0  ;;  %vm762_vm2 = vcmask 64512  }
  0xfc   : > { %708 = vrot.lane.b32.xlu1 %v1413_v29, %s1213_s8  ;;  %v599_v23 = vmul.f32 0.1, %v527_v14  ;;  %vm567_vm14 = vcmp.ge.f32.partialorder %v527_v14, 0.0  ;;  %v1490_v36 = vsel %vm569_vm0, %v535_v22, %v601_v30  ;;  %vm795_vm3 = vcmask 130048  }
  0xfd   : > { %706 = vrot.lane.b32.xlu0 %v1418_v33, %s1213_s8  ;;  %v1473_v25 = vsel %vm551_vm12, %v463_v5, %v583_v13 }
  0xfe   : > { %v1482_v32 = vsel %vm567_vm14, %v527_v14, %v599_v23 }
 0x100   : > { %688 = vrot.lane.b32.xlu1 %v1423_v39, %s1213_s8 }
 0x101   : > { %686 = vrot.lane.b32.xlu0 %v1428_v44, %s1213_s8 }
 0x104   : > { %720 = vrot.lane.b32.xlu1 %v1433_v49, %s1213_s8 }
 0x105   : > { %718 = vrot.lane.b32.xlu0 %v1438_v54, %s1213_s8 }
 0x108   : > { %684 = vrot.lane.b32.xlu1 %v1443_v60, %s1213_s8 }
 0x109   : > { %682 = vrot.lane.b32.xlu0 %v1448_v2, %s1213_s8 }
 0x10c   : > { %716 = vrot.lane.b32.xlu1 %v1453_v6, %s1213_s8 }
 0x10d   : > { %714 = vrot.lane.b32.xlu0 %v1458_v11, %s1213_s8 }
 0x110   : > { %696 = vrot.lane.b32.xlu1 %v1463_v16, %s1213_s8 }
 0x111   : > { %694 = vrot.lane.b32.xlu0 %v1468_v20, %s1213_s8 }
 0x114   : > { %692 = vrot.lane.b32.xlu1 %v1473_v25, %s1213_s8 }
 0x115   : > { %690 = vrot.lane.b32.xlu0 %v1478_v28, %s1213_s8 }
 0x118   : > { %724 = vrot.lane.b32.xlu1 %v1482_v32, %s1213_s8 }
 0x119   : > { %722 = vrot.lane.b32.xlu0 %v1486_v18, %s1213_s8 }
 0x11c   : > { %728 = vrot.lane.b32.xlu1 %v1490_v36, %s1213_s8 }
 0x11d   : > { %726 = vrot.lane.b32.xlu0 %v1494_v37, %s1213_s8 }
 0x152   : > { %v671_v38 = vpop.permute.xlu1 %670 }
 0x153   : > { %v703_v40 = vpop.permute.xlu0 %702  ;;  %v765_v41 = vsel %vm762_vm2, %v1342_v31, %v671_v38 }
 0x154   : > { %v781_v42 = vsel %vm762_vm2, %v1346_v35, %v703_v40  ;;  %800 = vst.msk [vmem:[%s1505_s11 + $0x20] sm:$0xff] %vm795_vm3, %v765_v41  ;;  %802 = vst.msk [vmem:[%s1505_s11 + $0x30] sm:$0xff] %vm795_vm3, %v765_v41 }
 0x155   : > { %832 = vst.msk [vmem:[%s1505_s11 + $0x120] sm:$0xff] %vm795_vm3, %v781_v42  ;;  %834 = vst.msk [vmem:[%s1505_s11 + $0x130] sm:$0xff] %vm795_vm3, %v781_v42 }
 0x156   : > { %v673_v31 = vpop.permute.xlu1 %672 }
 0x157   : > { %v766_v35 = vsel %vm762_vm2, %v1353_v43, %v673_v31  ;;  %v667_v45 = vpop.permute.xlu0 %666 }
 0x158   : > { %801 = vst.msk [vmem:[%s1505_s11 + $0x28] sm:$0xff] %vm795_vm3, %v766_v35  ;;  %803 = vst.msk [vmem:[%s1505_s11 + $0x38] sm:$0xff] %vm795_vm3, %v766_v35  ;;  %v763_v46 = vsel %vm762_vm2, %v1358_v47, %v667_v45 }
 0x159   : > { %796 = vst.msk [vmem:[%s1505_s11] sm:$0xff] %vm795_vm3, %v763_v46  ;;  %798 = vst.msk [vmem:[%s1505_s11 + $0x10] sm:$0xff] %vm795_vm3, %v763_v46 }
 0x15a   : > { %v705_v48 = vpop.permute.xlu1 %704 }
 0x15b   : > { %v782_v43 = vsel %vm762_vm2, %v1363_v52, %v705_v48  ;;  %v699_v50 = vpop.permute.xlu0 %698 }
 0x15c   : > { %833 = vst.msk [vmem:[%s1505_s11 + $0x128] sm:$0xff] %vm795_vm3, %v782_v43  ;;  %835 = vst.msk [vmem:[%s1505_s11 + $0x138] sm:$0xff] %vm795_vm3, %v782_v43  ;;  %v779_v47 = vsel %vm762_vm2, %v1368_v55, %v699_v50 }
 0x15d   : > { %828 = vst.msk [vmem:[%s1505_s11 + $0x100] sm:$0xff] %vm795_vm3, %v779_v47  ;;  %830 = vst.msk [vmem:[%s1505_s11 + $0x110] sm:$0xff] %vm795_vm3, %v779_v47 }
 0x15e   : > { %v701_v51 = vpop.permute.xlu1 %700 }
 0x15f   : > { %v780_v52 = vsel %vm762_vm2, %v1373_v59, %v701_v51  ;;  %v669_v53 = vpop.permute.xlu0 %668 }
 0x160   : > { %829 = vst.msk [vmem:[%s1505_s11 + $0x108] sm:$0xff] %vm795_vm3, %v780_v52  ;;  %831 = vst.msk [vmem:[%s1505_s11 + $0x118] sm:$0xff] %vm795_vm3, %v780_v52  ;;  %v764_v55 = vsel %vm762_vm2, %v1378_v63, %v669_v53 }
 0x161   : > { %797 = vst.msk [vmem:[%s1505_s11 + $0x8] sm:$0xff] %vm795_vm3, %v764_v55  ;;  %799 = vst.msk [vmem:[%s1505_s11 + $0x18] sm:$0xff] %vm795_vm3, %v764_v55 }
 0x162   : > { %v681_v56 = vpop.permute.xlu1 %680 }
 0x163   : > { %v770_v59 = vsel %vm762_vm2, %v1383_v3, %v681_v56  ;;  %v679_v57 = vpop.permute.xlu0 %678 }
 0x164   : > { %809 = vst.msk [vmem:[%s1505_s11 + $0x68] sm:$0xff] %vm795_vm3, %v770_v59  ;;  %811 = vst.msk [vmem:[%s1505_s11 + $0x78] sm:$0xff] %vm795_vm3, %v770_v59  ;;  %v769_v63 = vsel %vm762_vm2, %v1388_v7, %v679_v57 }
 0x165   : > { %808 = vst.msk [vmem:[%s1505_s11 + $0x60] sm:$0xff] %vm795_vm3, %v769_v63  ;;  %810 = vst.msk [vmem:[%s1505_s11 + $0x70] sm:$0xff] %vm795_vm3, %v769_v63 }
 0x166   : > { %v713_v58 = vpop.permute.xlu1 %712 }
 0x167   : > { %v786_v3 = vsel %vm762_vm2, %v1393_v12, %v713_v58  ;;  %v711_v61 = vpop.permute.xlu0 %710 }
 0x168   : > { %841 = vst.msk [vmem:[%s1505_s11 + $0x168] sm:$0xff] %vm795_vm3, %v786_v3  ;;  %843 = vst.msk [vmem:[%s1505_s11 + $0x178] sm:$0xff] %vm795_vm3, %v786_v3  ;;  %v785_v7 = vsel %vm762_vm2, %v1398_v15, %v711_v61 }
 0x169   : > { %840 = vst.msk [vmem:[%s1505_s11 + $0x160] sm:$0xff] %vm795_vm3, %v785_v7  ;;  %842 = vst.msk [vmem:[%s1505_s11 + $0x170] sm:$0xff] %vm795_vm3, %v785_v7 }
 0x16a   : > { %v677_v62 = vpop.permute.xlu1 %676 }
 0x16b   : > { %v768_v12 = vsel %vm762_vm2, %v1403_v21, %v677_v62  ;;  %v675_v0 = vpop.permute.xlu0 %674 }
 0x16c   : > { %805 = vst.msk [vmem:[%s1505_s11 + $0x48] sm:$0xff] %vm795_vm3, %v768_v12  ;;  %807 = vst.msk [vmem:[%s1505_s11 + $0x58] sm:$0xff] %vm795_vm3, %v768_v12  ;;  %v767_v15 = vsel %vm762_vm2, %v1408_v24, %v675_v0 }
 0x16d   : > { %804 = vst.msk [vmem:[%s1505_s11 + $0x40] sm:$0xff] %vm795_vm3, %v767_v15  ;;  %806 = vst.msk [vmem:[%s1505_s11 + $0x50] sm:$0xff] %vm795_vm3, %v767_v15 }
 0x16e   : > { %v709_v1 = vpop.permute.xlu1 %708 }
 0x16f   : > { %v784_v21 = vsel %vm762_vm2, %v1413_v29, %v709_v1  ;;  %v707_v4 = vpop.permute.xlu0 %706 }
 0x170   : > { %837 = vst.msk [vmem:[%s1505_s11 + $0x148] sm:$0xff] %vm795_vm3, %v784_v21  ;;  %839 = vst.msk [vmem:[%s1505_s11 + $0x158] sm:$0xff] %vm795_vm3, %v784_v21  ;;  %v783_v24 = vsel %vm762_vm2, %v1418_v33, %v707_v4 }
 0x171   : > { %836 = vst.msk [vmem:[%s1505_s11 + $0x140] sm:$0xff] %vm795_vm3, %v783_v24  ;;  %838 = vst.msk [vmem:[%s1505_s11 + $0x150] sm:$0xff] %vm795_vm3, %v783_v24 }
 0x172   : > { %v689_v5 = vpop.permute.xlu1 %688 }
 0x173   : > { %v774_v29 = vsel %vm762_vm2, %v1423_v39, %v689_v5  ;;  %v687_v8 = vpop.permute.xlu0 %686 }
 0x174   : > { %817 = vst.msk [vmem:[%s1505_s11 + $0xa8] sm:$0xff] %vm795_vm3, %v774_v29  ;;  %819 = vst.msk [vmem:[%s1505_s11 + $0xb8] sm:$0xff] %vm795_vm3, %v774_v29  ;;  %v773_v33 = vsel %vm762_vm2, %v1428_v44, %v687_v8 }
 0x175   : > { %816 = vst.msk [vmem:[%s1505_s11 + $0xa0] sm:$0xff] %vm795_vm3, %v773_v33  ;;  %818 = vst.msk [vmem:[%s1505_s11 + $0xb0] sm:$0xff] %vm795_vm3, %v773_v33 }
 0x176   : > { %v721_v9 = vpop.permute.xlu1 %720 }
 0x177   : > { %v790_v39 = vsel %vm762_vm2, %v1433_v49, %v721_v9  ;;  %v719_v10 = vpop.permute.xlu0 %718 }
 0x178   : > { %849 = vst.msk [vmem:[%s1505_s11 + $0x1a8] sm:$0xff] %vm795_vm3, %v790_v39  ;;  %851 = vst.msk [vmem:[%s1505_s11 + $0x1b8] sm:$0xff] %vm795_vm3, %v790_v39  ;;  %v789_v44 = vsel %vm762_vm2, %v1438_v54, %v719_v10 }
 0x179   : > { %848 = vst.msk [vmem:[%s1505_s11 + $0x1a0] sm:$0xff] %vm795_vm3, %v789_v44  ;;  %850 = vst.msk [vmem:[%s1505_s11 + $0x1b0] sm:$0xff] %vm795_vm3, %v789_v44 }
 0x17a   : > { %v685_v13 = vpop.permute.xlu1 %684 }
 0x17b   : > { %v772_v49 = vsel %vm762_vm2, %v1443_v60, %v685_v13  ;;  %v683_v14 = vpop.permute.xlu0 %682 }
 0x17c   : > { %813 = vst.msk [vmem:[%s1505_s11 + $0x88] sm:$0xff] %vm795_vm3, %v772_v49  ;;  %815 = vst.msk [vmem:[%s1505_s11 + $0x98] sm:$0xff] %vm795_vm3, %v772_v49  ;;  %v771_v54 = vsel %vm762_vm2, %v1448_v2, %v683_v14 }
 0x17d   : > { %812 = vst.msk [vmem:[%s1505_s11 + $0x80] sm:$0xff] %vm795_vm3, %v771_v54  ;;  %814 = vst.msk [vmem:[%s1505_s11 + $0x90] sm:$0xff] %vm795_vm3, %v771_v54 }
 0x17e   : > { %v717_v17 = vpop.permute.xlu1 %716 }
 0x17f   : > { %v788_v60 = vsel %vm762_vm2, %v1453_v6, %v717_v17  ;;  %v715_v19 = vpop.permute.xlu0 %714 }
 0x180   : > { %845 = vst.msk [vmem:[%s1505_s11 + $0x188] sm:$0xff] %vm795_vm3, %v788_v60  ;;  %847 = vst.msk [vmem:[%s1505_s11 + $0x198] sm:$0xff] %vm795_vm3, %v788_v60  ;;  %v787_v2 = vsel %vm762_vm2, %v1458_v11, %v715_v19 }
 0x181   : > { %844 = vst.msk [vmem:[%s1505_s11 + $0x180] sm:$0xff] %vm795_vm3, %v787_v2  ;;  %846 = vst.msk [vmem:[%s1505_s11 + $0x190] sm:$0xff] %vm795_vm3, %v787_v2 }
 0x182   : > { %v697_v22 = vpop.permute.xlu1 %696 }
 0x183   : > { %v778_v6 = vsel %vm762_vm2, %v1463_v16, %v697_v22  ;;  %v695_v23 = vpop.permute.xlu0 %694 }
 0x184   : > { %825 = vst.msk [vmem:[%s1505_s11 + $0xe8] sm:$0xff] %vm795_vm3, %v778_v6  ;;  %827 = vst.msk [vmem:[%s1505_s11 + $0xf8] sm:$0xff] %vm795_vm3, %v778_v6  ;;  %v777_v11 = vsel %vm762_vm2, %v1468_v20, %v695_v23 }
 0x185   : > { %824 = vst.msk [vmem:[%s1505_s11 + $0xe0] sm:$0xff] %vm795_vm3, %v777_v11  ;;  %826 = vst.msk [vmem:[%s1505_s11 + $0xf0] sm:$0xff] %vm795_vm3, %v777_v11 }
 0x186   : > { %v693_v26 = vpop.permute.xlu1 %692 }
 0x187   : > { %v776_v16 = vsel %vm762_vm2, %v1473_v25, %v693_v26  ;;  %v691_v27 = vpop.permute.xlu0 %690 }
 0x188   : > { %821 = vst.msk [vmem:[%s1505_s11 + $0xc8] sm:$0xff] %vm795_vm3, %v776_v16  ;;  %823 = vst.msk [vmem:[%s1505_s11 + $0xd8] sm:$0xff] %vm795_vm3, %v776_v16  ;;  %v775_v20 = vsel %vm762_vm2, %v1478_v28, %v691_v27 }
 0x189   : > { %820 = vst.msk [vmem:[%s1505_s11 + $0xc0] sm:$0xff] %vm795_vm3, %v775_v20  ;;  %822 = vst.msk [vmem:[%s1505_s11 + $0xd0] sm:$0xff] %vm795_vm3, %v775_v20 }
 0x18a   : > { %v725_v30 = vpop.permute.xlu1 %724 }
 0x18b   : > { %v792_v34 = vsel %vm762_vm2, %v1482_v32, %v725_v30  ;;  %v723_v25 = vpop.permute.xlu0 %722 }
 0x18c   : > { %853 = vst.msk [vmem:[%s1505_s11 + $0x1c8] sm:$0xff] %vm795_vm3, %v792_v34  ;;  %855 = vst.msk [vmem:[%s1505_s11 + $0x1d8] sm:$0xff] %vm795_vm3, %v792_v34  ;;  %v791_v28 = vsel %vm762_vm2, %v1486_v18, %v723_v25 }
 0x18d   : > { %852 = vst.msk [vmem:[%s1505_s11 + $0x1c0] sm:$0xff] %vm795_vm3, %v791_v28  ;;  %854 = vst.msk [vmem:[%s1505_s11 + $0x1d0] sm:$0xff] %vm795_vm3, %v791_v28 }
 0x18e   : > { %v729_v38 = vpop.permute.xlu1 %728 }
 0x18f   : > { %v794_v32 = vsel %vm762_vm2, %v1490_v36, %v729_v38  ;;  %v727_v40 = vpop.permute.xlu0 %726 }
 0x190   : > { %857 = vst.msk [vmem:[%s1505_s11 + $0x1e8] sm:$0xff] %vm795_vm3, %v794_v32  ;;  %859 = vst.msk [vmem:[%s1505_s11 + $0x1f8] sm:$0xff] %vm795_vm3, %v794_v32  ;;  %v793_v18 = vsel %vm762_vm2, %v1494_v37, %v727_v40 }
 0x191   : > { %856 = vst.msk [vmem:[%s1505_s11 + $0x1e0] sm:$0xff] %vm795_vm3, %v793_v18  ;;  %858 = vst.msk [vmem:[%s1505_s11 + $0x1f0] sm:$0xff] %vm795_vm3, %v793_v18 }
 0x192   : > { %1148 = shalt.err (!%p1145_p5)
}
 0x193   : > { %s1149_s4 = scalar_lea.hbm %s1688_s15, 8192  ;;  %s1153_s7 = scalar_lea.hbm %s1755_s3, 16384 }
 0x194   : > { %p1150_p6 = scmp.ne.s32.totalorder %s1688_s15, %s1149_s4  ;;  %p1154_p10 = scmp.lt.s32.totalorder %s1688_s15, %s1755_s3 }
 0x195   : > { %p1155_p11 = scmp.lt.s32.totalorder %s1153_s7, %s1149_s4 }
 0x196   : > { %p1151_p7 = pnand %p1150_p6, %p1276_p4 }
 0x197   : > { %p1156_p12 = por %p1155_p11, %p1154_p10 }
 0x198   : > { %p1152_p9 = pneg %p1151_p7 }
 0x19a   : > { %p1157_p13 = pnand %p1156_p12, %p1152_p9 }
 0x19c   : > { %1160 = shalt.err (!%p1157_p13)
}
 0x19d   : > { %s1215_s11 = smov 128  }
 0x19e   : > { %1062 = dma.vmem_to_hbm [thread:$0]  (%p1276_p4), %s1692_s19, 8192, %s1688_s15, %s1706_s26, %s1215_s11, %s1215_s11, %s1213_s8  }
 0x19f PF: > { %p1068_p0 = scmp.ge.s32.totalorder %s1211_s17, 2  ;;  %s892_s18 = sand.u32 1, %s1191_s12  }
 0x1a0   : > { %s893_s21 = scalar_lea.sflag [#allocation3], %s892_s18 }
 0x1a1   : > { %p1065_p1 = pnand %p1068_p0, %p1283_p8 }
 0x1a3   : > { %p1066_p2 = pneg %p1065_p1 }
 0x1a5   : > { %1186 = dma.done.wait (%p1066_p2), %s893_s21, 8192  }
 0x1a6   : > { %1188 = vsyncadd (%p1066_p2), %s893_s21, 4294959104  ;;  %s16_s17 = sadd.s32 1, %s1211_s17   ;;  %s1758_s12 = smov %s1195_s13 }
 0x1a7   : > { %p13_p3 = scmp.ge.s32.totalorder %s16_s17, 4   ;;  %s1759_s13 = smov %s1199_s14 }
 0x1a8   : > { %s1760_s14 = smov %s1289_s25  ;;  %s1761_s15 = smov %s1207_s16 }
 0x1a9   : > { %s1762_s16 = smov %s1764_s20  ;;  %15 = sbr.rel (!%p13_p3) target bundleno = 4 (0x4), region = 67 }
 0x1ae   :  { %898 = vsyncpa [#allocation3], 1 }
 0x1af   :  { %900 = vsyncpa [#allocation3 + $0x1], 1 }

</bundles_post_ra>
